<compile_context>
chip_gen: v7x
topology: tpu7x:2x2x1
jax: 0.10.0
libtpu: 0.0.40
codegen_flags: <defaults>
</compile_context>

<pallas_src>
import functools
import math

import jax
import jax.numpy as jnp
from jax.experimental import pallas as pl
from jax.experimental.pallas import tpu as pltpu

LEAKY_SLOPE = 0.01  # torch.nn.LeakyReLU default negative_slope


def _round_up(x, m):
    return ((x + m - 1) // m) * m


def _critic_kernel(n_hidden, x_ref, *rest):
    """rest = (w0, b0, ..., w_{n_hidden-1}, b_{n_hidden-1}, w_last, b_last, out_ref).

    Hidden layers run as (bt, in) @ (in, out) MXU matmuls with f32 accumulation and an
    f32 LeakyReLU epilogue.  The final Linear(hidden -> 1) is computed as
    (1, hidden) x (bt, hidden)^T -> (1, bt) so the result is lane-dense.
    """
    out_ref = rest[-1]
    b_last_ref = rest[-2]          # (1, 1)  f32
    w_last_ref = rest[-3]          # (1, hidden_last) f32 (row layout == torch (out, in))
    hidden_refs = rest[: 2 * n_hidden]

    compute_dtype = x_ref.dtype

    h = x_ref[...]                 # (bt, in_dim) in compute_dtype (bf16 fast path)
    act = None
    for layer in range(n_hidden):
        w = hidden_refs[2 * layer][...]        # (in_i, out_i) compute_dtype
        b = hidden_refs[2 * layer + 1][...]    # (1, out_i)    f32
        act = jnp.dot(h, w, preferred_element_type=jnp.float32) + b
        act = jnp.where(act > 0, act, LEAKY_SLOPE * act)   # LeakyReLU in f32
        h = act.astype(compute_dtype)

    # Final layer in f32: contract over the hidden dim of both operands
    # (flash-attention-style q @ k^T pattern) -> (1, bt) with batch on lanes.
    v = jnp.einsum("oh,bh->ob", w_last_ref[...], act,
                   preferred_element_type=jnp.float32)
    v = v + b_last_ref[...]        # (1, 1) broadcasts across lanes
    out_ref[...] = v.astype(out_ref.dtype)


def critic_forward(x, weights, biases, *, batch_tile=1024,
                   compute_dtype=jnp.bfloat16, out_dtype=None):
    """Run the Critic MLP with one pallas_call.

    x:       (B, in_dim) float32
    weights: list of (in_i, out_i) arrays (already transposed vs torch); last has out=1
    biases:  list of (1, out_i) arrays
    returns: (B, 1) in out_dtype (defaults to x.dtype)
    """
    B, in_dim = x.shape
    n_layers = len(weights)
    assert n_layers >= 2, "expected at least one hidden layer plus the output layer"
    assert weights[-1].shape[1] == 1, "Critic output dim must be 1"
    n_hidden = n_layers - 1
    if out_dtype is None:
        out_dtype = x.dtype

    # Batch tile: multiple of 128 (lane-dense output), no larger than the padded batch.
    bt = max(128, min(_round_up(batch_tile, 128), _round_up(B, 128)))
    Bp = _round_up(B, bt)
    num_tiles = Bp // bt

    xp = x if Bp == B else jnp.pad(x, ((0, Bp - B), (0, 0)))
    xp = xp.astype(compute_dtype)   # halve HBM traffic on the dominant input stream

    flat_params = []
    in_specs = [pl.BlockSpec((bt, in_dim), lambda i: (i, 0))]
    for w, b in zip(weights[:-1], biases[:-1]):
        w_c = w.astype(compute_dtype)
        b_c = b.astype(jnp.float32)
        flat_params.append(w_c)
        flat_params.append(b_c)
        in_specs.append(pl.BlockSpec(w_c.shape, lambda i: (0, 0)))
        in_specs.append(pl.BlockSpec(b_c.shape, lambda i: (0, 0)))

    # Final layer stays f32; weight passed as a (1, hidden_last) row.
    w_last = weights[-1].astype(jnp.float32).T            # (1, hidden_last)
    b_last = biases[-1].astype(jnp.float32).reshape(1, 1)  # (1, 1)
    flat_params.append(w_last)
    flat_params.append(b_last)
    in_specs.append(pl.BlockSpec(w_last.shape, lambda i: (0, 0)))
    in_specs.append(pl.BlockSpec(b_last.shape, lambda i: (0, 0)))

    out_specs = pl.BlockSpec((1, bt), lambda i: (0, i))

    kernel = functools.partial(_critic_kernel, n_hidden)

    out_row = pl.pallas_call(
        kernel,
        out_shape=jax.ShapeDtypeStruct((1, Bp), out_dtype),
        grid_spec=pltpu.PrefetchScalarGridSpec(
            num_scalar_prefetch=0,
            grid=(num_tiles,),
            in_specs=in_specs,
            out_specs=out_specs,
        ),
        compiler_params=pltpu.CompilerParams(
            # Batch tiles are independent -> shard across TensorCores (v7x megacore).
            dimension_semantics=("parallel",),
        ),
    )(xp, *flat_params)

    # (1, Bp) -> (Bp, 1) is a pure reshape (same element order); then drop padding rows.
    return out_row.reshape(Bp, 1)[:B]


def init_critic_params(key, in_dim, hidden_dims, out_dim=1):
    """Deterministic parameter init mirroring torch:
      - weights: kaiming_normal_ (fan_in, leaky_relu gain -> std = sqrt(2 / fan_in))
      - biases:  zeros
    Weights are returned as (in, out) [transposed relative to torch's (out, in)].
    """
    dims = [in_dim] + list(hidden_dims) + [out_dim]
    weights, biases = [], []
    for li in range(len(dims) - 1):
        fan_in, fan_out = dims[li], dims[li + 1]
        key, sub = jax.random.split(key)
        std = math.sqrt(2.0 / fan_in)
        w = std * jax.random.normal(sub, (fan_in, fan_out), dtype=jnp.float32)
        b = jnp.zeros((1, fan_out), dtype=jnp.float32)
        weights.append(w)
        biases.append(b)
    return weights, biases


def critic_ref(x, weights, biases, compute_dtype=jnp.float32):
    """Pure-JAX reference mirroring the kernel's dtype handling (final layer in f32)."""
    h = x.astype(compute_dtype)
    act = None
    for w, b in zip(weights[:-1], biases[:-1]):
        act = jnp.dot(h, w.astype(compute_dtype),
                      preferred_element_type=jnp.float32) + b.astype(jnp.float32)
        act = jnp.where(act > 0, act, LEAKY_SLOPE * act)
        h = act.astype(compute_dtype)
    out = jnp.dot(act, weights[-1].astype(jnp.float32),
                  preferred_element_type=jnp.float32) + biases[-1].astype(jnp.float32)
    return out


if __name__ == "__main__":
    # Config mimic: graph_embedding.hidden_dim=16, jk='cat', num_heads=[4,4]
    #   -> in_dim = 3 * 16 * 2 = 96 ; critic.hidden_dims = [32, 32] ; out_dim = 1
    hidden_dim = 16
    num_heads = [4, 4]
    in_dim = 3 * hidden_dim * len(num_heads)   # 96
    hidden_dims = [32, 32]

    key = jax.random.PRNGKey(0)
    key, xkey1 = jax.random.split(key)
    weights, biases = init_critic_params(key, in_dim, hidden_dims, out_dim=1)

    # --- Test 1: tiny batch (single padded tile), full-f32 compute path ---------------
    B1 = 8
    x1 = jax.random.normal(xkey1, (B1, in_dim), dtype=jnp.float32)
    out1 = jax.block_until_ready(
        critic_forward(x1, weights, biases, compute_dtype=jnp.float32))
    ref1 = critic_ref(x1, weights, biases, compute_dtype=jnp.float32)
    assert out1.shape == (B1, 1), out1.shape
    assert jnp.allclose(out1, ref1, atol=2e-2, rtol=2e-2), "f32 path mismatch vs reference"

    # --- Test 2: multi-tile grid + batch padding + default bf16 fast path -------------
    B2 = 300
    key, xkey2 = jax.random.split(key)
    x2 = jax.random.normal(xkey2, (B2, in_dim), dtype=jnp.float32)
    out2 = jax.block_until_ready(
        critic_forward(x2, weights, biases, batch_tile=128))  # -> 3 grid steps, pad to 384
    ref2 = critic_ref(x2, weights, biases, compute_dtype=jnp.bfloat16)
    assert out2.shape == (B2, 1), out2.shape
    assert jnp.allclose(out2, ref2, atol=2e-2, rtol=2e-2), "bf16 path mismatch vs reference"

    print("KERNEL_OK")
</pallas_src>

<mosaic_0001>
module attributes {stable_mosaic.version = 11 : i64} {
  func.func @_critic_kernel(%arg0: i32, %arg1: memref<128x96xf32, #tpu.memory_space<vmem>>, %arg2: memref<96x32xf32, #tpu.memory_space<vmem>>, %arg3: memref<1x32xf32, #tpu.memory_space<vmem>>, %arg4: memref<32x32xf32, #tpu.memory_space<vmem>>, %arg5: memref<1x32xf32, #tpu.memory_space<vmem>>, %arg6: memref<1x32xf32, #tpu.memory_space<vmem>>, %arg7: memref<1x1xf32, #tpu.memory_space<vmem>>, %arg8: memref<1x128xf32, #tpu.memory_space<vmem>>) attributes {dimension_semantics = [#tpu.dimension_semantics<parallel>], iteration_bounds = array<i64: 1>, scalar_prefetch = 0 : i64, scratch_operands = 0 : i64, tpu.core_type = #tpu.core_type<tc>, window_params = [{transform_indices = @transform_0, window_bounds = array<i64: 128, 96>}, {pipeline_mode = #tpu.pipeline_mode<synchronous>, transform_indices = @transform_1, window_bounds = array<i64: 96, 32>}, {pipeline_mode = #tpu.pipeline_mode<synchronous>, transform_indices = @transform_2, window_bounds = array<i64: 1, 32>}, {pipeline_mode = #tpu.pipeline_mode<synchronous>, transform_indices = @transform_3, window_bounds = array<i64: 32, 32>}, {pipeline_mode = #tpu.pipeline_mode<synchronous>, transform_indices = @transform_4, window_bounds = array<i64: 1, 32>}, {pipeline_mode = #tpu.pipeline_mode<synchronous>, transform_indices = @transform_5, window_bounds = array<i64: 1, 32>}, {pipeline_mode = #tpu.pipeline_mode<synchronous>, transform_indices = @transform_6, window_bounds = array<i64: 1, 1>}, {transform_indices = @transform_7, window_bounds = array<i64: 1, 128>}]} {
    %c0 = arith.constant 0 : index
    %c0_0 = arith.constant 0 : index
    %0 = vector.load %arg1[%c0, %c0_0] : memref<128x96xf32, #tpu.memory_space<vmem>>, vector<128x96xf32>
    %c0_1 = arith.constant 0 : index
    %c0_2 = arith.constant 0 : index
    %1 = vector.load %arg2[%c0_1, %c0_2] : memref<96x32xf32, #tpu.memory_space<vmem>>, vector<96x32xf32>
    %c0_3 = arith.constant 0 : index
    %c0_4 = arith.constant 0 : index
    %2 = vector.load %arg3[%c0_3, %c0_4] : memref<1x32xf32, #tpu.memory_space<vmem>>, vector<1x32xf32>
    %cst = arith.constant dense<0.000000e+00> : vector<128x32xf32>
    %3 = tpu.matmul %0, %1, %cst {dimension_numbers = #tpu.dot_dimension_numbers<[1], [0], [0], [1], [0, 0, 1, 1], [], []>} : vector<128x96xf32>, vector<96x32xf32>, vector<128x32xf32> -> vector<128x32xf32>
    %4 = vector.broadcast %2 : vector<1x32xf32> to vector<128x32xf32>
    %5 = arith.addf %3, %4 : vector<128x32xf32>
    %cst_5 = arith.constant 0.000000e+00 : f32
    %6 = vector.broadcast %cst_5 : f32 to vector<128x32xf32>
    %7 = arith.cmpf ogt, %5, %6 : vector<128x32xf32>
    %cst_6 = arith.constant 0.00999999977 : f32
    %8 = vector.broadcast %cst_6 : f32 to vector<128x32xf32>
    %9 = arith.mulf %8, %5 : vector<128x32xf32>
    %10 = arith.select %7, %5, %9 : vector<128x32xi1>, vector<128x32xf32>
    %c0_7 = arith.constant 0 : index
    %c0_8 = arith.constant 0 : index
    %11 = vector.load %arg4[%c0_7, %c0_8] : memref<32x32xf32, #tpu.memory_space<vmem>>, vector<32x32xf32>
    %c0_9 = arith.constant 0 : index
    %c0_10 = arith.constant 0 : index
    %12 = vector.load %arg5[%c0_9, %c0_10] : memref<1x32xf32, #tpu.memory_space<vmem>>, vector<1x32xf32>
    %cst_11 = arith.constant dense<0.000000e+00> : vector<128x32xf32>
    %13 = tpu.matmul %10, %11, %cst_11 {dimension_numbers = #tpu.dot_dimension_numbers<[1], [0], [0], [1], [0, 0, 1, 1], [], []>} : vector<128x32xf32>, vector<32x32xf32>, vector<128x32xf32> -> vector<128x32xf32>
    %14 = vector.broadcast %12 : vector<1x32xf32> to vector<128x32xf32>
    %15 = arith.addf %13, %14 : vector<128x32xf32>
    %cst_12 = arith.constant 0.000000e+00 : f32
    %16 = vector.broadcast %cst_12 : f32 to vector<128x32xf32>
    %17 = arith.cmpf ogt, %15, %16 : vector<128x32xf32>
    %cst_13 = arith.constant 0.00999999977 : f32
    %18 = vector.broadcast %cst_13 : f32 to vector<128x32xf32>
    %19 = arith.mulf %18, %15 : vector<128x32xf32>
    %20 = arith.select %17, %15, %19 : vector<128x32xi1>, vector<128x32xf32>
    %c0_14 = arith.constant 0 : index
    %c0_15 = arith.constant 0 : index
    %21 = vector.load %arg6[%c0_14, %c0_15] : memref<1x32xf32, #tpu.memory_space<vmem>>, vector<1x32xf32>
    "tpu.trace_start"() <{level = 10 : i32, message = "oh,bh->ob"}> : () -> ()
    %cst_16 = arith.constant dense<0.000000e+00> : vector<1x128xf32>
    %22 = tpu.matmul %21, %20, %cst_16 {dimension_numbers = #tpu.dot_dimension_numbers<[1], [1], [0], [0], [0, 0, 1, 0], [], []>} : vector<1x32xf32>, vector<128x32xf32>, vector<1x128xf32> -> vector<1x128xf32>
    "tpu.trace_stop"() : () -> ()
    %c0_17 = arith.constant 0 : index
    %c0_18 = arith.constant 0 : index
    %23 = vector.load %arg7[%c0_17, %c0_18] : memref<1x1xf32, #tpu.memory_space<vmem>>, vector<1x1xf32>
    %24 = vector.broadcast %23 : vector<1x1xf32> to vector<1x128xf32>
    %25 = arith.addf %22, %24 : vector<1x128xf32>
    %c0_19 = arith.constant 0 : index
    %c0_20 = arith.constant 0 : index
    %26 = vector.load %arg8[%c0_19, %c0_20] : memref<1x128xf32, #tpu.memory_space<vmem>>, vector<1x128xf32>
    tpu.vector_store %arg8[%c0_19, %c0_20], %25 {strides = array<i32>} : memref<1x128xf32, #tpu.memory_space<vmem>>, vector<1x128xf32>,
    return
  }
  func.func @transform_0(%arg0: i32) -> (i32, i32) {
    %c0_i32 = arith.constant 0 : i32
    %c0_i32_0 = arith.constant 0 : i32
    return %arg0, %c0_i32 : i32, i32
  }
  func.func @transform_1(%arg0: i32) -> (i32, i32) {
    %c0_i32 = arith.constant 0 : i32
    %c0_i32_0 = arith.constant 0 : i32
    %c0_i32_1 = arith.constant 0 : i32
    return %c0_i32, %c0_i32_0 : i32, i32
  }
  func.func @transform_2(%arg0: i32) -> (i32, i32) {
    %c0_i32 = arith.constant 0 : i32
    %c0_i32_0 = arith.constant 0 : i32
    %c0_i32_1 = arith.constant 0 : i32
    return %c0_i32, %c0_i32_0 : i32, i32
  }
  func.func @transform_3(%arg0: i32) -> (i32, i32) {
    %c0_i32 = arith.constant 0 : i32
    %c0_i32_0 = arith.constant 0 : i32
    %c0_i32_1 = arith.constant 0 : i32
    return %c0_i32, %c0_i32_0 : i32, i32
  }
  func.func @transform_4(%arg0: i32) -> (i32, i32) {
    %c0_i32 = arith.constant 0 : i32
    %c0_i32_0 = arith.constant 0 : i32
    %c0_i32_1 = arith.constant 0 : i32
    return %c0_i32, %c0_i32_0 : i32, i32
  }
  func.func @transform_5(%arg0: i32) -> (i32, i32) {
    %c0_i32 = arith.constant 0 : i32
    %c0_i32_0 = arith.constant 0 : i32
    %c0_i32_1 = arith.constant 0 : i32
    return %c0_i32, %c0_i32_0 : i32, i32
  }
  func.func @transform_6(%arg0: i32) -> (i32, i32) {
    %c0_i32 = arith.constant 0 : i32
    %c0_i32_0 = arith.constant 0 : i32
    %c0_i32_1 = arith.constant 0 : i32
    return %c0_i32, %c0_i32_0 : i32, i32
  }
  func.func @transform_7(%arg0: i32) -> (i32, i32) {
    %c0_i32 = arith.constant 0 : i32
    %c0_i32_0 = arith.constant 0 : i32
    return %c0_i32, %arg0 : i32, i32
  }
}

</mosaic_0001>

<bundles_post_ra>
// kernel: tpu_custom_call.1
= control target key start
LH: loop header
LB: loop body
LE: loop exit
PB: predicated region body
PF: predicated region fallthrough
CT: control target
= control target key end

     0   :  { %s1295_s0 = inlined_call_operand.vmem [shape: f32[128,96], index: 0, kind: input, shape index: {}]   ;;  %s1296_s1 = inlined_call_operand.vmem [shape: f32[96,32], index: 1, kind: input, shape index: {}]   ;;  %s1297_s2 = inlined_call_operand.vmem [shape: f32[1,32], index: 2, kind: input, shape index: {}]   ;;  %s1298_s3 = inlined_call_operand.vmem [shape: f32[32,32], index: 3, kind: input, shape index: {}]   ;;  %s1299_s4 = inlined_call_operand.vmem [shape: f32[1,32], index: 4, kind: input, shape index: {}]   ;;  %s1300_s5 = inlined_call_operand.vmem [shape: f32[1,32], index: 5, kind: input, shape index: {}]   ;;  %s1301_s6 = inlined_call_operand.<no memory space> [shape: f32[1,1], index: 6, kind: input, shape index: {}]   ;;  %s1302_s7 = inlined_call_operand.hbm [shape: f32[1,128], index: 7, kind: output, shape index: {}]  }
   0x1   :  { %v12_v0 = vstv %s1301_s6 }
   0x2   :  { %13 = vst [vmem:[#allocation2] sm:$0x1] %v12_v0 }
   0x3   :  { %v45_v1 = vld [vmem:[%s1296_s1] sm:$0xff]  ;;  %v46_v2 = vld [vmem:[%s1296_s1 + $0x8] sm:$0xff]  ;;  %v47_v3 = vld [vmem:[%s1296_s1 + $0x10] sm:$0xff]  ;;  %vm64_vm0 = vcmask 785408  }
   0x4   :  { %v937_v4 = vpack.c.bf16 %v46_v2, %v45_v1  ;;  %v48_v5 = vld [vmem:[%s1296_s1 + $0x18] sm:$0xff]  ;;  %v49_v7 = vld [vmem:[%s1296_s1 + $0x20] sm:$0xff]  ;;  %v50_v8 = vld [vmem:[%s1296_s1 + $0x28] sm:$0xff] }
   0x5   :  { %v941_v6 = vpack.c.bf16 %v48_v5, %v47_v3  ;;  %v29_v9 = vld [vmem:[%s1295_s0] sm:$0xff]  ;;  %v945_v10 = vpack.c.bf16 %v50_v8, %v49_v7  ;;  %v51_v11 = vld [vmem:[%s1296_s1 + $0x30] sm:$0xff]  ;;  %v52_v12 = vld [vmem:[%s1296_s1 + $0x38] sm:$0xff] }
   0x6   :  { %938 = vmatprep.subr.bf16.mxu0 %v937_v4  ;;  %846 = vmatprep.mubr.msk.f32.mxu0 %vm64_vm0, %v29_v9  ;;  %v949_v13 = vpack.c.bf16 %v52_v12, %v51_v11 }
   0x7   :  { %940 = vmatpush3.bf16.msra.mxu0 %v937_v4 }
   0x8   :  { %942 = vmatprep.subr.bf16.mxu0 %v941_v6 }
   0xb   :  { %944 = vmatpush3.bf16.msra.mxu0 %v941_v6 }
   0xc   :  { %946 = vmatprep.subr.bf16.mxu0 %v945_v10 }
   0xd   :  { %14 = vsyncpa [#allocation4], 0  ;;  %v53_v14 = vld [vmem:[%s1296_s1 + $0x40] sm:$0xff]  ;;  %v54_v15 = vld [vmem:[%s1296_s1 + $0x48] sm:$0xff]  ;;  %vm317_vm3 = vcmask 261120   ;;  %s1035_s18 = smov [#allocation3]  }
   0xe   :  { %v953_v16 = vpack.c.bf16 %v54_v15, %v53_v14  ;;  %v55_v17 = vld [vmem:[%s1296_s1 + $0x50] sm:$0xff]  ;;  %v56_v18 = vld [vmem:[%s1296_s1 + $0x58] sm:$0xff]  ;;  %v30_v20 = vld [vmem:[%s1295_s0 + $0x8] sm:$0xff]  ;;  %s698_s19 = sshll.u32 %s1035_s18, 4  ;;  %s699_s19 = int_to_ptr.vmem [resolvable:$true] %s698_s19 }
   0xf   :  { %948 = vmatpush3.bf16.msra.mxu0 %v945_v10  ;;  %v957_v19 = vpack.c.bf16 %v56_v18, %v55_v17  ;;  %v31_v21 = vld [vmem:[%s1295_s0 + $0x10] sm:$0xff]  ;;  %v32_v22 = vld [vmem:[%s1295_s0 + $0x18] sm:$0xff]  ;;  %v33_v23 = vld [vmem:[%s1295_s0 + $0x20] sm:$0xff]  ;;  %s1007_s20 = scalar_lea.vmem %s699_s19, 16  ;;  %s1011_s21 = scalar_lea.vmem %s699_s19, 32 }
  0x10   :  { %950 = vmatprep.subr.bf16.mxu0 %v949_v13  ;;  %v34_v24 = vld [vmem:[%s1295_s0 + $0x28] sm:$0xff]  ;;  %v35_v25 = vld [vmem:[%s1295_s0 + $0x30] sm:$0xff]  ;;  %v36_v26 = vld [vmem:[%s1295_s0 + $0x38] sm:$0xff]  ;;  %p1008_p0 = scmp.ne.s32.totalorder %s699_s19, %s1007_s20  ;;  %p1012_p1 = scmp.lt.s32.totalorder %s699_s19, %s699_s19 }
  0x11   :  { %v37_v27 = vld [vmem:[%s1295_s0 + $0x40] sm:$0xff]  ;;  %v38_v28 = vld [vmem:[%s1295_s0 + $0x48] sm:$0xff]  ;;  %v39_v29 = vld [vmem:[%s1295_s0 + $0x50] sm:$0xff]  ;;  %p1013_p2 = scmp.lt.s32.totalorder %s1011_s21, %s1007_s20 }
  0x12   :  { %v40_v30 = vld [vmem:[%s1295_s0 + $0x58] sm:$0xff]  ;;  %v41_v31 = vld [vmem:[%s1295_s0 + $0x60] sm:$0xff]  ;;  %v42_v32 = vld [vmem:[%s1295_s0 + $0x68] sm:$0xff] }
  0x13   :  { %952 = vmatpush3.bf16.msra.mxu0 %v949_v13  ;;  %v43_v33 = vld [vmem:[%s1295_s0 + $0x70] sm:$0xff]  ;;  %v44_v34 = vld [vmem:[%s1295_s0 + $0x78] sm:$0xff]  ;;  %v306_v35 = vld [vmem:[%s1298_s3] sm:$0xff]  ;;  %p1014_p3 = por %p1013_p2, %p1012_p1 }
  0x14   :  { %954 = vmatprep.subr.bf16.mxu0 %v953_v16  ;;  %v307_v36 = vld [vmem:[%s1298_s3 + $0x8] sm:$0xff]  ;;  %v308_v38 = vld [vmem:[%s1298_s3 + $0x10] sm:$0xff]  ;;  %v309_v39 = vld [vmem:[%s1298_s3 + $0x18] sm:$0xff] }
  0x15   :  { %v961_v37 = vpack.c.bf16 %v307_v36, %v306_v35  ;;  %v965_v40 = vpack.c.bf16 %v309_v39, %v308_v38  ;;  %v1194_v41 = vld [vmem:[%s1297_s2] ss:$0 sm:$0xff]  ;;  %p1015_p4 = pnand %p1014_p3, %p1008_p0 }
  0x17   :  { %956 = vmatpush3.bf16.msra.mxu0 %v953_v16  ;;  %962 = vmatprep.subr.bf16.mxu1 %v961_v37 }
  0x18   :  { %958 = vmatprep.subr.bf16.mxu0 %v957_v19  ;;  %964 = vmatpush3.bf16.msra.mxu1 %v961_v37 }
  0x19   :  { %966 = vmatprep.subr.bf16.mxu1 %v965_v40 }
  0x1b   :  { %960 = vmatpush3.bf16.msra.mxu0 %v957_v19 }
  0x1c   :  { %968 = vmatpush3.bf16.msra.mxu1 %v965_v40 }
  0x1e   :  { %847 = vmatmul.mubr.msk.f32.vlgmr.msra.gmra.mrb[0].mxu0 %vm64_vm0, %v30_v20 }
  0x1f   :  { %849 = vmatprep.mubr.msk.f32.mxu0 %vm64_vm0, %v31_v21 }
  0x22   :  { %850 = vmatmul.mubr.msk.f32.gmra.mrb[2].mxu0 %vm64_vm0, %v32_v22 }
  0x23   :  { %852 = vmatprep.mubr.msk.f32.mxu0 %vm64_vm0, %v33_v23 }
  0x26   :  { %853 = vmatmul.mubr.msk.f32.gmra.mrb[4].mxu0 %vm64_vm0, %v34_v24 }
  0x27   :  { %855 = vmatprep.mubr.msk.f32.mxu0 %vm64_vm0, %v35_v25 }
  0x2a   :  { %856 = vmatmul.mubr.msk.f32.gmra.mrb[6].mxu0 %vm64_vm0, %v36_v26 }
  0x2b   :  { %858 = vmatprep.mubr.msk.f32.mxu0 %vm64_vm0, %v37_v27 }
  0x2e   :  { %859 = vmatmul.mubr.msk.f32.gmra.mrb[8].mxu0 %vm64_vm0, %v38_v28 }
  0x2f   :  { %861 = vmatprep.mubr.msk.f32.mxu0 %vm64_vm0, %v39_v29 }
  0x32   :  { %862 = vmatmul.mubr.msk.f32.gmra.mrb[10].mxu0 %vm64_vm0, %v40_v30 }
  0x33   :  { %864 = vmatprep.mubr.msk.f32.mxu0 %vm64_vm0, %v41_v31 }
  0x36   :  { %865 = vmatmul.mubr.msk.f32.gmra.mrb[12].mxu0 %vm64_vm0, %v42_v32 }
  0x37   :  { %867 = vmatprep.mubr.msk.f32.mxu0 %vm64_vm0, %v43_v33 }
  0x3a   :  { %868 = vmatmul.mubr.msk.f32.gmra.mrb[14].mxu0 %vm64_vm0, %v44_v34 }
  0xf1   :  { %v848_v42 = vpop.f32.mrb[0].mxu0 }
  0xf2   :  { %v185_v43 = vadd.f32 %v848_v42, %v1194_v41  ;;  %v179_v44 = vpop.f32.mrb[1].mxu0 }
  0xf3   :  { %v180_v45 = vadd.f32 %v1194_v41, %v179_v44  ;;  %v1033_v44 = vmov 0.0  }
  0xf4   :  { %v275_v46 = vmul.f32 0.01, %v185_v43  ;;  %vm259_vm1 = vcmp.gt.f32.partialorder %v185_v43, 0.0 }
  0xf5   :  { %v851_v47 = vpop.f32.mrb[2].mxu0  ;;  %vm258_vm2 = vcmp.gt.f32.partialorder %v180_v45, 0.0  ;;  %v274_v48 = vmul.f32 0.01, %v180_v45 }
  0xf6   :  { %v195_v49 = vadd.f32 %v851_v47, %v1194_v41  ;;  %v189_v50 = vpop.f32.mrb[3].mxu0  ;;  %v291_v54 = vsel %vm259_vm1, %v185_v43, %v275_v46  ;;  %v1031_v43 = vmov 0.0|0.0   ;;  %v1232_v46 = vld [vmem:[%s1299_s4] ss:$0 sm:$0xff] }
  0xf7   :  { %v190_v51 = vadd.f32 %v1194_v41, %v189_v50  ;;  %v290_v52 = vsel %vm258_vm2, %v180_v45, %v274_v48  ;;  %969 = vmatprep.subr.bf16.mxu1 %v1031_v43  ;;  %vm1032_vm2 = vmmov 0   ;;  %v1034_v45 = vmov 0  }
  0xf8   :  { %vm261_vm4 = vcmp.gt.f32.partialorder %v195_v49, 0.0  ;;  %v277_v53 = vmul.f32 0.01, %v195_v49  ;;  %878 = vmatprep.mubr.msk.f32.mxu1 %vm317_vm3, %v290_v52  ;;  %1006 = vset.pattern.permute.xlu0 %v1034_v45 }
  0xf9   :  { %vm260_vm5 = vcmp.gt.f32.partialorder %v190_v51, 0.0  ;;  %v276_v55 = vmul.f32 0.01, %v190_v51  ;;  %879 = vmatmul.mubr.msk.f32.vlgmr.msra.gmra.mrb[0].mxu1 %vm317_vm3, %v291_v54  ;;  %v854_v56 = vpop.f32.mrb[4].mxu0 }
  0xfa   :  { %v205_v57 = vadd.f32 %v854_v56, %v1194_v41  ;;  %v199_v58 = vpop.f32.mrb[5].mxu0  ;;  %v293_v59 = vsel %vm261_vm4, %v195_v49, %v277_v53 }
  0xfb   :  { %v200_v60 = vadd.f32 %v1194_v41, %v199_v58  ;;  %v292_v61 = vsel %vm260_vm5, %v190_v51, %v276_v55 }
  0xfc   :  { %vm263_vm6 = vcmp.gt.f32.partialorder %v205_v57, 0.0  ;;  %v279_v62 = vmul.f32 0.01, %v205_v57  ;;  %881 = vmatprep.mubr.msk.f32.mxu1 %vm317_vm3, %v292_v61 }
  0xfd   :  { %vm262_vm7 = vcmp.gt.f32.partialorder %v200_v60, 0.0  ;;  %v278_v63 = vmul.f32 0.01, %v200_v60  ;;  %882 = vmatmul.mubr.msk.f32.gmra.mrb[2].mxu1 %vm317_vm3, %v293_v59  ;;  %v857_v0 = vpop.f32.mrb[6].mxu0 }
  0xfe   :  { %v215_v1 = vadd.f32 %v857_v0, %v1194_v41  ;;  %v295_v2 = vsel %vm263_vm6, %v205_v57, %v279_v62  ;;  %v209_v3 = vpop.f32.mrb[7].mxu0  ;;  %vm1240_vm6 = vmpackc.low %vm317_vm3, %vm317_vm3 }
  0xff   :  { %v294_v4 = vsel %vm262_vm7, %v200_v60, %v278_v63  ;;  %v210_v5 = vadd.f32 %v1194_v41, %v209_v3 }
 0x100   :  { %884 = vmatprep.mubr.msk.f32.mxu1 %vm317_vm3, %v294_v4  ;;  %vm265_vm8 = vcmp.gt.f32.partialorder %v215_v1, 0.0  ;;  %v281_v6 = vmul.f32 0.01, %v215_v1 }
 0x101   :  { %885 = vmatmul.mubr.msk.f32.gmra.mrb[4].mxu1 %vm317_vm3, %v295_v2  ;;  %vm264_vm9 = vcmp.gt.f32.partialorder %v210_v5, 0.0  ;;  %v280_v7 = vmul.f32 0.01, %v210_v5  ;;  %v860_v8 = vpop.f32.mrb[8].mxu0 }
 0x102   :  { %v225_v9 = vadd.f32 %v860_v8, %v1194_v41  ;;  %v297_v10 = vsel %vm265_vm8, %v215_v1, %v281_v6  ;;  %v219_v11 = vpop.f32.mrb[9].mxu0 }
 0x103   :  { %v296_v12 = vsel %vm264_vm9, %v210_v5, %v280_v7  ;;  %v220_v13 = vadd.f32 %v1194_v41, %v219_v11 }
 0x104   :  { %887 = vmatprep.mubr.msk.f32.mxu1 %vm317_vm3, %v296_v12  ;;  %vm267_vm10 = vcmp.gt.f32.partialorder %v225_v9, 0.0  ;;  %v283_v14 = vmul.f32 0.01, %v225_v9 }
 0x105   :  { %888 = vmatmul.mubr.msk.f32.gmra.mrb[6].mxu1 %vm317_vm3, %v297_v10  ;;  %vm266_vm11 = vcmp.gt.f32.partialorder %v220_v13, 0.0  ;;  %v282_v15 = vmul.f32 0.01, %v220_v13  ;;  %v863_v16 = vpop.f32.mrb[10].mxu0 }
 0x106   :  { %v235_v17 = vadd.f32 %v863_v16, %v1194_v41  ;;  %v299_v18 = vsel %vm267_vm10, %v225_v9, %v283_v14  ;;  %v229_v19 = vpop.f32.mrb[11].mxu0 }
 0x107   :  { %v298_v20 = vsel %vm266_vm11, %v220_v13, %v282_v15  ;;  %v230_v21 = vadd.f32 %v1194_v41, %v229_v19 }
 0x108   :  { %890 = vmatprep.mubr.msk.f32.mxu1 %vm317_vm3, %v298_v20  ;;  %vm269_vm12 = vcmp.gt.f32.partialorder %v235_v17, 0.0  ;;  %v285_v22 = vmul.f32 0.01, %v235_v17 }
 0x109   :  { %891 = vmatmul.mubr.msk.f32.gmra.mrb[8].mxu1 %vm317_vm3, %v299_v18  ;;  %vm268_vm13 = vcmp.gt.f32.partialorder %v230_v21, 0.0  ;;  %v284_v23 = vmul.f32 0.01, %v230_v21  ;;  %v866_v24 = vpop.f32.mrb[12].mxu0 }
 0x10a   :  { %v245_v25 = vadd.f32 %v866_v24, %v1194_v41  ;;  %v301_v26 = vsel %vm269_vm12, %v235_v17, %v285_v22  ;;  %v239_v27 = vpop.f32.mrb[13].mxu0 }
 0x10b   :  { %v300_v28 = vsel %vm268_vm13, %v230_v21, %v284_v23  ;;  %v240_v29 = vadd.f32 %v1194_v41, %v239_v27 }
 0x10c   :  { %893 = vmatprep.mubr.msk.f32.mxu1 %vm317_vm3, %v300_v28  ;;  %vm271_vm14 = vcmp.gt.f32.partialorder %v245_v25, 0.0  ;;  %v287_v30 = vmul.f32 0.01, %v245_v25 }
 0x10d   :  { %894 = vmatmul.mubr.msk.f32.gmra.mrb[10].mxu1 %vm317_vm3, %v301_v26  ;;  %vm270_vm15 = vcmp.gt.f32.partialorder %v240_v29, 0.0  ;;  %v286_v31 = vmul.f32 0.01, %v240_v29  ;;  %v869_v32 = vpop.f32.mrb[14].mxu0 }
 0x10e   :  { %v255_v33 = vadd.f32 %v869_v32, %v1194_v41  ;;  %v303_v34 = vsel %vm271_vm14, %v245_v25, %v287_v30  ;;  %v249_v35 = vpop.f32.mrb[15].mxu0 }
 0x10f   :  { %v302_v36 = vsel %vm270_vm15, %v240_v29, %v286_v31  ;;  %v250_v37 = vadd.f32 %v1194_v41, %v249_v35  ;;  %v560_v41 = vld [vmem:[#allocation2] sm:$0x1] }
 0x110   :  { %896 = vmatprep.mubr.msk.f32.mxu1 %vm317_vm3, %v302_v36  ;;  %vm273_vm0 = vcmp.gt.f32.partialorder %v255_v33, 0.0  ;;  %v289_v38 = vmul.f32 0.01, %v255_v33  ;;  %563 = vperm.xlu0 %1006, %v560_v41  }
 0x111   :  { %897 = vmatmul.mubr.msk.f32.gmra.mrb[12].mxu1 %vm317_vm3, %v303_v34  ;;  %vm272_vm1 = vcmp.gt.f32.partialorder %v250_v37, 0.0  ;;  %v288_v39 = vmul.f32 0.01, %v250_v37 }
 0x112   :  { %v305_v40 = vsel %vm273_vm0, %v255_v33, %v289_v38 }
 0x113   :  { %v304_v42 = vsel %vm272_vm1, %v250_v37, %v288_v39 }
 0x114   :  { %899 = vmatprep.mubr.msk.f32.mxu1 %vm317_vm3, %v304_v42 }
 0x115   :  { %900 = vmatmul.mubr.msk.f32.gmra.mrb[14].mxu1 %vm317_vm3, %v305_v40 }
 0x116   :  { %934 = vmatprep.mubr.msk.f32.mxu1 %vm1032_vm2, %v1033_v44 }
 0x1cc   :  { %v880_v47 = vpop.f32.mrb[0].mxu1 }
 0x1cd   :  { %v438_v48 = vadd.f32 %v880_v47, %v1232_v46  ;;  %v432_v49 = vpop.f32.mrb[1].mxu1 }
 0x1ce   :  { %v433_v50 = vadd.f32 %v1232_v46, %v432_v49 }
 0x1cf   :  { %vm512_vm4 = vcmp.gt.f32.partialorder %v438_v48, 0.0  ;;  %v528_v51 = vmul.f32 0.01, %v438_v48 }
 0x1d0   :  { %vm511_vm5 = vcmp.gt.f32.partialorder %v433_v50, 0.0  ;;  %v527_v52 = vmul.f32 0.01, %v433_v50  ;;  %v883_v53 = vpop.f32.mrb[2].mxu1 }
 0x1d1   :  { %v544_v54 = vsel %vm512_vm4, %v438_v48, %v528_v51  ;;  %v448_v55 = vadd.f32 %v883_v53, %v1232_v46  ;;  %v442_v56 = vpop.f32.mrb[3].mxu1 }
 0x1d2   :  { %v543_v57 = vsel %vm511_vm5, %v433_v50, %v527_v52  ;;  %v443_v58 = vadd.f32 %v1232_v46, %v442_v56 }
 0x1d3   :  { %v970_v60 = vpack.c.bf16 %v544_v54, %v543_v57  ;;  %vm514_vm7 = vcmp.gt.f32.partialorder %v448_v55, 0.0  ;;  %v530_v61 = vmul.f32 0.01, %v448_v55 }
 0x1d4   :  { %vm513_vm8 = vcmp.gt.f32.partialorder %v443_v58, 0.0  ;;  %v529_v62 = vmul.f32 0.01, %v443_v58  ;;  %v886_v63 = vpop.f32.mrb[4].mxu1 }
 0x1d5   :  { %v546_v0 = vsel %vm514_vm7, %v448_v55, %v530_v61  ;;  %v458_v1 = vadd.f32 %v886_v63, %v1232_v46  ;;  %972 = vmatpush3.bf16.xpose.msk.msra.mxu1 %vm1240_vm6, %v970_v60  ;;  %v452_v2 = vpop.f32.mrb[5].mxu1 }
 0x1d6   :  { %v545_v3 = vsel %vm513_vm8, %v443_v58, %v529_v62  ;;  %v453_v4 = vadd.f32 %v1232_v46, %v452_v2  ;;  %973 = vmatprep.subr.bf16.mxu1 %v1031_v43  ;;  %v566_v58 = vlaneseq  ;;  %v564_v62 = vpop.permute.xlu0 %563 }
 0x1d7   :  { %v974_v5 = vpack.c.bf16 %v546_v0, %v545_v3  ;;  %vm516_vm9 = vcmp.gt.f32.partialorder %v458_v1, 0.0  ;;  %v532_v6 = vmul.f32 0.01, %v458_v1 }
 0x1d8   :  { %vm515_vm10 = vcmp.gt.f32.partialorder %v453_v4, 0.0  ;;  %v531_v7 = vmul.f32 0.01, %v453_v4  ;;  %v889_v8 = vpop.f32.mrb[6].mxu1  ;;  %v567_v60 = vshrl.u32 %v566_v58, 7 }
 0x1d9   :  { %v548_v9 = vsel %vm516_vm9, %v458_v1, %v532_v6  ;;  %v468_v10 = vadd.f32 %v889_v8, %v1232_v46  ;;  %v462_v11 = vpop.f32.mrb[7].mxu1 }
 0x1da   :  { %v547_v12 = vsel %vm515_vm10, %v453_v4, %v531_v7  ;;  %v463_v13 = vadd.f32 %v1232_v46, %v462_v11  ;;  %v568_v61 = vsub.s32 0, %v567_v60 }
 0x1db   :  { %v978_v14 = vpack.c.bf16 %v548_v9, %v547_v12  ;;  %vm518_vm11 = vcmp.gt.f32.partialorder %v468_v10, 0.0  ;;  %v534_v15 = vmul.f32 0.01, %v468_v10 }
 0x1dc   :  { %vm517_vm12 = vcmp.gt.f32.partialorder %v463_v13, 0.0  ;;  %v533_v16 = vmul.f32 0.01, %v463_v13  ;;  %v892_v17 = vpop.f32.mrb[8].mxu1  ;;  %v569_v63 = vrot.slane %v564_v62, %v568_v61 }
 0x1dd   :  { %v550_v18 = vsel %vm518_vm11, %v468_v10, %v534_v15  ;;  %976 = vmatpush3.bf16.xpose.msk.msra.mxu1 %vm1240_vm6, %v974_v5  ;;  %v478_v19 = vadd.f32 %v892_v17, %v1232_v46  ;;  %v472_v20 = vpop.f32.mrb[9].mxu1 }
 0x1de   :  { %v549_v21 = vsel %vm517_vm12, %v463_v13, %v533_v16  ;;  %977 = vmatprep.subr.bf16.mxu1 %v1031_v43  ;;  %v473_v22 = vadd.f32 %v1232_v46, %v472_v20 }
 0x1df   :  { %v982_v23 = vpack.c.bf16 %v550_v18, %v549_v21  ;;  %vm520_vm13 = vcmp.gt.f32.partialorder %v478_v19, 0.0  ;;  %v536_v24 = vmul.f32 0.01, %v478_v19 }
 0x1e0   :  { %vm519_vm14 = vcmp.gt.f32.partialorder %v473_v22, 0.0  ;;  %v535_v25 = vmul.f32 0.01, %v473_v22  ;;  %v895_v26 = vpop.f32.mrb[10].mxu1 }
 0x1e1   :  { %v552_v27 = vsel %vm520_vm13, %v478_v19, %v536_v24  ;;  %v488_v28 = vadd.f32 %v895_v26, %v1232_v46  ;;  %v482_v29 = vpop.f32.mrb[11].mxu1 }
 0x1e2   :  { %v551_v30 = vsel %vm519_vm14, %v473_v22, %v535_v25  ;;  %v483_v31 = vadd.f32 %v1232_v46, %v482_v29 }
 0x1e3   :  { %v986_v32 = vpack.c.bf16 %v552_v27, %v551_v30  ;;  %vm522_vm15 = vcmp.gt.f32.partialorder %v488_v28, 0.0  ;;  %v538_v33 = vmul.f32 0.01, %v488_v28 }
 0x1e4   :  { %vm521_vm0 = vcmp.gt.f32.partialorder %v483_v31, 0.0  ;;  %v537_v34 = vmul.f32 0.01, %v483_v31  ;;  %v898_v35 = vpop.f32.mrb[12].mxu1 }
 0x1e5   :  { %980 = vmatpush3.bf16.xpose.msk.msra.mxu1 %vm1240_vm6, %v978_v14  ;;  %v554_v36 = vsel %vm522_vm15, %v488_v28, %v538_v33  ;;  %v498_v37 = vadd.f32 %v898_v35, %v1232_v46  ;;  %v492_v38 = vpop.f32.mrb[13].mxu1 }
 0x1e6   :  { %981 = vmatprep.subr.bf16.mxu1 %v1031_v43  ;;  %v553_v39 = vsel %vm521_vm0, %v483_v31, %v537_v34  ;;  %v493_v40 = vadd.f32 %v1232_v46, %v492_v38 }
 0x1e7   :  { %v990_v42 = vpack.c.bf16 %v554_v36, %v553_v39  ;;  %vm524_vm1 = vcmp.gt.f32.partialorder %v498_v37, 0.0  ;;  %v540_v44 = vmul.f32 0.01, %v498_v37 }
 0x1e8   :  { %vm523_vm2 = vcmp.gt.f32.partialorder %v493_v40, 0.0  ;;  %v539_v41 = vmul.f32 0.01, %v493_v40  ;;  %v901_v45 = vpop.f32.mrb[14].mxu1 }
 0x1e9   :  { %v556_v47 = vsel %vm524_vm1, %v498_v37, %v540_v44  ;;  %v508_v48 = vadd.f32 %v901_v45, %v1232_v46  ;;  %v502_v49 = vpop.f32.mrb[15].mxu1 }
 0x1ea   :  { %v555_v50 = vsel %vm523_vm2, %v493_v40, %v539_v41  ;;  %v503_v51 = vadd.f32 %v1232_v46, %v502_v49  ;;  %v559_v46 = vld [vmem:[%s1300_s5] sm:$0x1] }
 0x1eb   :  { %v994_v52 = vpack.c.bf16 %v556_v47, %v555_v50  ;;  %vm526_vm4 = vcmp.gt.f32.partialorder %v508_v48, 0.0  ;;  %v542_v53 = vmul.f32 0.01, %v508_v48 }
 0x1ec   :  { %vm525_vm5 = vcmp.gt.f32.partialorder %v503_v51, 0.0  ;;  %v541_v54 = vmul.f32 0.01, %v503_v51 }
 0x1ed   :  { %984 = vmatpush3.bf16.xpose.msk.msra.mxu1 %vm1240_vm6, %v982_v23  ;;  %v558_v55 = vsel %vm526_vm4, %v508_v48, %v542_v53 }
 0x1ee   :  { %985 = vmatprep.subr.bf16.mxu1 %v1031_v43  ;;  %v557_v56 = vsel %vm525_vm5, %v503_v51, %v541_v54 }
 0x1ef   :  { %v998_v57 = vpack.c.bf16 %v558_v55, %v557_v56 }
 0x1f5   :  { %988 = vmatpush3.bf16.xpose.msk.msra.mxu1 %vm1240_vm6, %v986_v32 }
 0x1f6   :  { %989 = vmatprep.subr.bf16.mxu1 %v1031_v43 }
 0x1fd   :  { %992 = vmatpush3.bf16.xpose.msk.msra.mxu1 %vm1240_vm6, %v990_v42 }
 0x1fe   :  { %993 = vmatprep.subr.bf16.mxu1 %v1031_v43 }
 0x205   :  { %996 = vmatpush3.bf16.xpose.msk.msra.mxu1 %vm1240_vm6, %v994_v52 }
 0x206   :  { %997 = vmatprep.subr.bf16.mxu1 %v1031_v43 }
 0x20d   :  { %1000 = vmatpush3.bf16.xpose.msk.msra.mxu1 %vm1240_vm6, %v998_v57 }
 0x214   :  { %935 = vmatmul.mubr.msk.f32.vlgmr.msra.gmra.mrb[16].mxu1 %vm317_vm3, %v559_v46 }
 0x2e7   :  { %v687_v0 = vpop.f32.mrb[16].mxu1 }
 0x2e8   :  { %v688_v1 = vadd.f32 %v687_v0, %v569_v63  ;;  %v936_v2 = vpop.f32.mrb[17].mxu1 }
 0x2ea   :  { %691 = vst [vmem:[#allocation3] sm:$0x1] %v688_v1 }
 0x2eb   :  { %1018 = shalt.err (!%p1015_p4)
}
 0x2ec   :  { %s1019_s23 = scalar_lea.hbm %s1302_s7, 16 }
 0x2ed   :  { %p1020_p5 = scmp.ne.s32.totalorder %s1302_s7, %s1019_s23  ;;  %p1023_p6 = scmp.lt.u32.totalorder %s1019_s23, %s1302_s7 }
 0x2ef   :  { %p1025_p7 = pnand %p1023_p6, %p1020_p5 }
 0x2f1   :  { %1028 = shalt.err (!%p1025_p7)
}
 0x2f2   :  { %701 = dma.vmem_to_hbm [thread:$0]  %s699_s19, 16, %s1302_s7, [#allocation4]  }
 0x2f3   :  { %1029 = dma.done.wait [#allocation4], 16  }
 0x2f4   :  { %1030 = vsyncadd [#allocation4], 4294967280 }
 0x2f5   :  { %705 = vsyncpa [#allocation4], 1 }

</bundles_post_ra>
